<compile_context>
chip_gen: v6e
topology: v6e:2x2x1
jax: 0.10.0
libtpu: 0.0.40
codegen_flags: <defaults>
</compile_context>

<pallas_src>
import functools

import jax
import jax.numpy as jnp
from jax.experimental import pallas as pl
from jax.experimental.pallas import tpu as pltpu

_LANE = 128
_SUBLANE = 8
_TK_MAX = 16384                      # upper bound on the K tile
_FALLBACK_VMEM = 64 * 1024 * 1024    # v7x-sized fallback: safe on every generation


def _round_up(x, m):
    return ((x + m - 1) // m) * m


def _vmem_caps():
    """(tile_budget_bytes, scoped_vmem_limit_bytes), derived per chip generation."""
    cap = _FALLBACK_VMEM
    try:
        cap = int(getattr(pltpu.get_tpu_info(), "vmem_capacity_bytes", _FALLBACK_VMEM))
    except Exception:
        pass
    tile_budget = (cap * 5) // 8   # what tiling decisions may spend on buffers
    vmem_limit = (cap * 3) // 4    # scoped limit handed to Mosaic (compiler headroom)
    return int(tile_budget), int(vmem_limit)


def _sq_f32_bytes(m):
    """Physical VMEM footprint of one (m, m) float32 buffer (vreg-tile padded)."""
    return _round_up(m, _SUBLANE) * _round_up(m, _LANE) * 4


def _plan_k(m, k, itemsize, resident_bytes, tile_budget):
    """Choose the K tile.  Returns (tk, num_steps, needs_mask).

    Never pads or copies the feature array in HBM:
      * if K fits in one tile, the block's last dim equals the full array dim
        (exempt from the 128-lane rule) -> single step, no mask;
      * otherwise TK is a multiple of 128, grid = cdiv(K, TK), and the ragged
        last tile (if any) is masked in-kernel.
    """
    sub = _SUBLANE * max(1, 4 // itemsize)          # sublane packing of input dtype
    m_phys = _round_up(m, sub)
    avail = max(tile_budget - resident_bytes, 0)
    tk_fit = avail // (2 * m_phys * itemsize)       # double-buffered F tile
    tk_fit = max(_LANE, (tk_fit // _LANE) * _LANE)
    tk_cap = min(tk_fit, _TK_MAX)
    if k <= tk_cap:
        return k, 1, False
    num = -(-k // tk_cap)                           # cdiv
    return tk_cap, num, (k % tk_cap != 0)


def _features(x):
    a, b, c, d = x.shape
    return x.reshape(a * b, c * d), a * b, c * d


def _masked_tile(feat_ref, step, tk, k_total, needs_mask, compute_dtype):
    f = feat_ref[...]
    if compute_dtype is not None:
        f = f.astype(compute_dtype)
    if needs_mask:
        col = jax.lax.broadcasted_iota(jnp.int32, f.shape, dimension=1)
        f = jnp.where(col + step * tk < k_total, f, jnp.zeros_like(f))
    return f


# ---------------------------------------------------------------------------
# Kernels
# ---------------------------------------------------------------------------
def _gram_kernel(feat_ref, g_ref, *, inv_norm, k_total, tk, needs_mask, compute_dtype):
    """Accumulate F @ F.T over K tiles directly into the f32 output block."""
    step = pl.program_id(0)

    @pl.when(step == 0)
    def _():
        g_ref[...] = jnp.zeros_like(g_ref)

    f = _masked_tile(feat_ref, step, tk, k_total, needs_mask, compute_dtype)
    g_ref[...] += jax.lax.dot_general(
        f, f,
        dimension_numbers=(((1,), (1,)), ((), ())),   # contract K on both sides
        preferred_element_type=jnp.float32,
    )

    @pl.when(step == pl.num_programs(0) - 1)
    def _():
        g_ref[...] = g_ref[...] * jnp.float32(inv_norm)


def _style_loss_kernel(feat_ref, target_ref, loss_ref, acc_ref, *,
                       inv_norm, inv_mm, k_total, tk, needs_mask, compute_dtype):
    """Fused gram + MSE; the gram never leaves VMEM, only the scalar loss does."""
    step = pl.program_id(0)

    @pl.when(step == 0)
    def _():
        acc_ref[...] = jnp.zeros_like(acc_ref)

    f = _masked_tile(feat_ref, step, tk, k_total, needs_mask, compute_dtype)
    acc_ref[...] += jax.lax.dot_general(
        f, f,
        dimension_numbers=(((1,), (1,)), ((), ())),
        preferred_element_type=jnp.float32,
    )

    @pl.when(step == pl.num_programs(0) - 1)
    def _():
        diff = acc_ref[...] * jnp.float32(inv_norm) - target_ref[...]
        loss_ref[0] = jnp.sum(diff * diff) * jnp.float32(inv_mm)


# ---------------------------------------------------------------------------
# Wrappers
# ---------------------------------------------------------------------------
def gram_matrix(x, *, compute_dtype=None):
    """x: (a, b, c, d) NCHW -> gram matrix (a*b, a*b), float32 (PyTorch-compatible)."""
    feats, m, k = _features(x)
    itemsize = jnp.dtype(x.dtype).itemsize
    tile_budget, vmem_limit = _vmem_caps()
    resident = 2 * _sq_f32_bytes(m)            # f32 gram output block (assume 2 bufs)
    tk, num_k, needs_mask = _plan_k(m, k, itemsize, resident, tile_budget)
    kernel = functools.partial(
        _gram_kernel, inv_norm=1.0 / float(m * k), k_total=k, tk=tk,
        needs_mask=needs_mask, compute_dtype=compute_dtype)
    return pl.pallas_call(
        kernel,
        out_shape=jax.ShapeDtypeStruct((m, m), jnp.float32),
        grid_spec=pltpu.PrefetchScalarGridSpec(
            num_scalar_prefetch=0,
            grid=(num_k,),
            in_specs=[pl.BlockSpec((m, tk), lambda i: (0, i))],
            out_specs=pl.BlockSpec((m, m), lambda i: (0, 0)),
        ),
        compiler_params=pltpu.CompilerParams(
            dimension_semantics=("arbitrary",),
            vmem_limit_bytes=vmem_limit),
        cost_estimate=pl.CostEstimate(
            flops=2 * m * m * k,
            transcendentals=0,
            bytes_accessed=m * k * itemsize + m * m * 4),
    )(feats)


def style_loss_forward(x, target_gram, *, compute_dtype=None):
    """Returns (x, loss).  target_gram: (M, M) float32 gram of the target feature."""
    feats, m, k = _features(x)
    assert target_gram.shape == (m, m), "target gram does not match a*b of the input"
    itemsize = jnp.dtype(x.dtype).itemsize
    tile_budget, vmem_limit = _vmem_caps()
    # Residents: f32 accumulator scratch + (double-buffered, never refetched) target.
    resident = _sq_f32_bytes(m) + 2 * _sq_f32_bytes(m)
    tk, num_k, needs_mask = _plan_k(m, k, itemsize, resident, tile_budget)
    kernel = functools.partial(
        _style_loss_kernel,
        inv_norm=1.0 / float(m * k), inv_mm=1.0 / float(m * m),
        k_total=k, tk=tk, needs_mask=needs_mask, compute_dtype=compute_dtype)
    loss = pl.pallas_call(
        kernel,
        out_shape=jax.ShapeDtypeStruct((1,), jnp.float32),
        grid_spec=pltpu.PrefetchScalarGridSpec(
            num_scalar_prefetch=0,
            grid=(num_k,),
            in_specs=[
                pl.BlockSpec((m, tk), lambda i: (0, i)),   # F tile (pipelined)
                pl.BlockSpec((m, m), lambda i: (0, 0)),    # target gram (resident)
            ],
            out_specs=pl.BlockSpec(memory_space=pltpu.MemorySpace.SMEM),
            scratch_shapes=[pltpu.VMEM((m, m), jnp.float32)],
        ),
        compiler_params=pltpu.CompilerParams(
            dimension_semantics=("arbitrary",),
            vmem_limit_bytes=vmem_limit),
        cost_estimate=pl.CostEstimate(
            flops=2 * m * m * k,
            transcendentals=0,
            bytes_accessed=m * k * itemsize + 2 * m * m * 4),
    )(feats, target_gram.astype(jnp.float32))
    return x, loss[0]


class StyleLoss:
    """JAX/Pallas port of the PyTorch StyleLoss module (forward only)."""

    def __init__(self, target_feature, *, compute_dtype=None):
        # compute_dtype=jnp.bfloat16 is an opt-in fast path for f32 inputs on
        # v5e (bf16 MXU); default None keeps full f32 numerics.
        self._compute_dtype = compute_dtype
        self.target = gram_matrix(target_feature, compute_dtype=compute_dtype)
        self._m = self.target.shape[0]
        self.loss = None

    def __call__(self, x):
        a, b, _, _ = x.shape
        assert a * b == self._m, "a*b of the input must match the target feature"
        out, loss = style_loss_forward(x, self.target,
                                       compute_dtype=self._compute_dtype)
        self.loss = loss
        return out


# ---------------------------------------------------------------------------
# Reference (plain JAX) for a sanity check
# ---------------------------------------------------------------------------
def _gram_ref(x):
    a, b, c, d = x.shape
    f = x.reshape(a * b, c * d).astype(jnp.float32)
    return (f @ f.T) / (a * b * c * d)


if __name__ == "__main__":
    key = jax.random.PRNGKey(0)
    k1, k2 = jax.random.split(key)

    # Small shapes consistent with an NCHW feature map.
    a, b, c, d = 2, 4, 16, 16
    target_feature = jax.random.normal(k1, (a, b, c, d), dtype=jnp.float32)
    x = jax.random.normal(k2, (a, b, c, d), dtype=jnp.float32)

    module = StyleLoss(target_feature)
    out = jax.block_until_ready(module(x))
    loss = jax.block_until_ready(module.loss)

    # Correctness check against pure-JAX reference.
    G_ref = _gram_ref(x)
    T_ref = _gram_ref(target_feature)
    loss_ref = jnp.mean((G_ref - T_ref) ** 2)
    G_pallas = jax.block_until_ready(gram_matrix(x))

    assert out.shape == x.shape and jnp.allclose(out, x), "forward must pass input through"
    assert jnp.allclose(G_pallas, G_ref, rtol=1e-5, atol=1e-6)
    assert jnp.allclose(module.target, T_ref, rtol=1e-5, atol=1e-6)
    assert jnp.allclose(loss, loss_ref, rtol=1e-5, atol=1e-6), (loss, loss_ref)

    print("KERNEL_OK")
</pallas_src>

<mosaic_0001>
module attributes {stable_mosaic.version = 11 : i64} {
  func.func @_gram_kernel(%arg0: i32, %arg1: memref<8x256xf32, #tpu.memory_space<vmem>>, %arg2: memref<8x8xf32, #tpu.memory_space<vmem>>) attributes {dimension_semantics = [#tpu.dimension_semantics<arbitrary>], iteration_bounds = array<i64: 1>, scalar_prefetch = 0 : i64, scratch_operands = 0 : i64, tpu.core_type = #tpu.core_type<tc>, window_params = [{transform_indices = @transform_0, window_bounds = array<i64: 8, 256>}, {pipeline_mode = #tpu.pipeline_mode<synchronous>, transform_indices = @transform_1, window_bounds = array<i64: 8, 8>}]} {
    %c0_i32 = arith.constant 0 : i32
    %0 = arith.cmpi eq, %arg0, %c0_i32 : i32
    %1 = arith.extui %0 : i1 to i32
    %c0_i32_0 = arith.constant 0 : i32
    %2 = arith.cmpi ne, %1, %c0_i32_0 : i32
    scf.if %2 {
      %cst_8 = arith.constant 0.000000e+00 : f32
      %11 = vector.broadcast %cst_8 : f32 to vector<8x8xf32>
      %c0_9 = arith.constant 0 : index
      %c0_10 = arith.constant 0 : index
      %12 = vector.load %arg2[%c0_9, %c0_10] : memref<8x8xf32, #tpu.memory_space<vmem>>, vector<8x8xf32>
      tpu.vector_store %arg2[%c0_9, %c0_10], %11 {strides = array<i32>} : memref<8x8xf32, #tpu.memory_space<vmem>>, vector<8x8xf32>,
    } else {
    }
    %c0 = arith.constant 0 : index
    %c0_1 = arith.constant 0 : index
    %3 = vector.load %arg1[%c0, %c0_1] : memref<8x256xf32, #tpu.memory_space<vmem>>, vector<8x256xf32>
    %c0_2 = arith.constant 0 : index
    %c0_3 = arith.constant 0 : index
    %4 = vector.load %arg2[%c0_2, %c0_3] : memref<8x8xf32, #tpu.memory_space<vmem>>, vector<8x8xf32>
    %cst = arith.constant dense<0.000000e+00> : vector<8x8xf32>
    %5 = tpu.matmul %3, %3, %cst {dimension_numbers = #tpu.dot_dimension_numbers<[1], [1], [0], [0], [0, 0, 1, 0], [], []>} : vector<8x256xf32>, vector<8x256xf32>, vector<8x8xf32> -> vector<8x8xf32>
    %6 = arith.addf %4, %5 : vector<8x8xf32>
    %c0_4 = arith.constant 0 : index
    %c0_5 = arith.constant 0 : index
    %7 = vector.load %arg2[%c0_4, %c0_5] : memref<8x8xf32, #tpu.memory_space<vmem>>, vector<8x8xf32>
    tpu.vector_store %arg2[%c0_4, %c0_5], %6 {strides = array<i32>} : memref<8x8xf32, #tpu.memory_space<vmem>>, vector<8x8xf32>,
    %c0_i32_6 = arith.constant 0 : i32
    %8 = arith.cmpi eq, %arg0, %c0_i32_6 : i32
    %9 = arith.extui %8 : i1 to i32
    %c0_i32_7 = arith.constant 0 : i32
    %10 = arith.cmpi ne, %9, %c0_i32_7 : i32
    scf.if %10 {
      %c0_8 = arith.constant 0 : index
      %c0_9 = arith.constant 0 : index
      %11 = vector.load %arg2[%c0_8, %c0_9] : memref<8x8xf32, #tpu.memory_space<vmem>>, vector<8x8xf32>
      %cst_10 = arith.constant 4.8828125E-4 : f32
      %12 = vector.broadcast %cst_10 : f32 to vector<8x8xf32>
      %13 = arith.mulf %11, %12 : vector<8x8xf32>
      %c0_11 = arith.constant 0 : index
      %c0_12 = arith.constant 0 : index
      %14 = vector.load %arg2[%c0_11, %c0_12] : memref<8x8xf32, #tpu.memory_space<vmem>>, vector<8x8xf32>
      tpu.vector_store %arg2[%c0_11, %c0_12], %13 {strides = array<i32>} : memref<8x8xf32, #tpu.memory_space<vmem>>, vector<8x8xf32>,
    } else {
    }
    return
  }
  func.func @transform_0(%arg0: i32) -> (i32, i32) {
    %c0_i32 = arith.constant 0 : i32
    %c0_i32_0 = arith.constant 0 : i32
    return %c0_i32, %arg0 : i32, i32
  }
  func.func @transform_1(%arg0: i32) -> (i32, i32) {
    %c0_i32 = arith.constant 0 : i32
    %c0_i32_0 = arith.constant 0 : i32
    %c0_i32_1 = arith.constant 0 : i32
    return %c0_i32, %c0_i32_0 : i32, i32
  }
}

</mosaic_0001>

<bundles_post_ra>
// kernel: tpu_custom_call.1
= control target key start
LH: loop header
LB: loop body
LE: loop exit
PB: predicated region body
PF: predicated region fallthrough
CT: control target
= control target key end

     0   :  { %6 = vsyncpa [#allocation3], 0  ;;  %s193_s0 = inlined_call_operand.hbm [shape: f32[8,256], index: 0, kind: input, shape index: {}]   ;;  %s194_s1 = inlined_call_operand.hbm [shape: f32[8,8], index: 1, kind: output, shape index: {}]  }
   0x1   :  { %7 = vsyncpa [#allocation4], 0  ;;  %s171_s6 = smov [#allocation2]  }
   0x2   :  { %s14_s7 = sshll.u32 %s171_s6, 4  ;;  %s15_s7 = int_to_ptr.vmem [resolvable:$true] %s14_s7 }
   0x3   :  { %s135_s8 = scalar_lea.vmem %s15_s7, 256  ;;  %p140_p1 = scmp.lt.s32.totalorder %s15_s7, %s15_s7 }
   0x4   :  { %p136_p0 = scmp.ne.s32.totalorder %s15_s7, %s135_s8  ;;  %p141_p2 = scmp.lt.s32.totalorder %s135_s8, %s135_s8 }
   0x6   :  { %p142_p3 = por %p141_p2, %p140_p1 }
   0x8   :  { %p143_p4 = pnand %p142_p3, %p136_p0 }
   0xa   :  { %146 = shalt.err (!%p143_p4)
}
   0xb   :  { %17 = dma.hbm_to_vmem [thread:$0]  %s193_s0, 256, %s15_s7, [#allocation3]  }
   0xc   :  { %167 = dma.done.wait [#allocation3], 256  }
   0xd   :  { %168 = vsyncadd [#allocation3], 4294967040  ;;  %vm25_vm0 = vcmask 64512   ;;  %v172_v0 = vmov 0.0   ;;  %v28_v1 = vld [vmem:[#allocation2 + $0x8] sm:$0xff]  ;;  %v27_v2 = vld [vmem:[#allocation2] sm:$0xff] }
   0xe   :  { %26 = vst.msk [vmem:[#allocation5] sm:$0xff] %vm25_vm0, %v172_v0  ;;  %60 = vmatprep.subr.mxu0 %v28_v1  ;;  %94 = vmatprep.mubr.f32.mxu0 %v28_v1  ;;  %s173_s11 = smov [#allocation5]  }
   0xf   :  { %61 = vmatpush1.xpose.msra.mxu0 %v27_v2  ;;  %s115_s0 = sshll.u32 %s173_s11, 4  ;;  %s116_s0 = int_to_ptr.vmem [resolvable:$true] %s115_s0 }
  0x10   :  { %s147_s12 = scalar_lea.vmem %s116_s0, 128  ;;  %p152_p6 = scmp.lt.s32.totalorder %s116_s0, %s116_s0 }
  0x11   :  { %p148_p5 = scmp.ne.s32.totalorder %s116_s0, %s147_s12  ;;  %p153_p7 = scmp.lt.s32.totalorder %s147_s12, %s147_s12 }
  0x12   :  { %95 = vmatmul.mubr.f32.vlgmr.msra.gmra.mxu0 %v27_v2 }
  0x13   :  { %p154_p8 = por %p153_p7, %p152_p6 }
  0x15   :  { %v29_v3 = vld [vmem:[#allocation5] sm:$0xff]  ;;  %p155_p9 = pnand %p154_p8, %p148_p5 }
  0xd2   :  { %v96_v4 = vpop.f32.mrf.mxu0 }
  0xd3   :  { %v100_v5 = vadd.f32 %v96_v4, %v29_v3 }
  0xd4   :  { %v98_v6 = vpop.f32.mrf.mxu0 }
  0xd5   :  { %102 = vst.msk [vmem:[#allocation5] sm:$0xff] %vm25_vm0, %v100_v5 }
  0xdc   :  { %v106_v7 = vld [vmem:[#allocation5] sm:$0xff] }
  0xdd   :  { %v107_v8 = vmul.f32 0.00048828125, %v106_v7 }
  0xdf   :  { %108 = vst.msk [vmem:[#allocation5] sm:$0xff] %vm25_vm0, %v107_v8 }
  0xe0   :  { %158 = shalt.err (!%p155_p9)
}
  0xe1   :  { %118 = dma.vmem_to_hbm [thread:$0]  %s116_s0, 128, %s194_s1, [#allocation4]  }
  0xe2   :  { %169 = dma.done.wait [#allocation4], 128  }
  0xe3   :  { %170 = vsyncadd [#allocation4], 4294967168 }
  0xe4   :  { %122 = vsyncpa [#allocation3], 1 }
  0xe5   :  { %123 = vsyncpa [#allocation4], 1 }

</bundles_post_ra>
